<compile_context>
chip_gen: v7x
topology: tpu7x:2x2x1
jax: 0.10.0
libtpu: 0.0.40
codegen_flags: <defaults>
</compile_context>

<pallas_src>
import functools

import jax
import jax.numpy as jnp
from jax.experimental import pallas as pl
from jax.experimental.pallas import tpu as pltpu

LANE = 128
SUBLANE = 8
# Only force a >=2-tile split (for v7x's two TensorCores) when each tile would
# still have at least this many rows; tiny batches keep one maximal tile.
_MIN_SPLIT_ROWS = 512


def _round_up(n, m):
    return (n + m - 1) // m * m


def policy_kernel(x_ref, w1_ref, b1_ref, wh_ref, bh_ref, out_ref, *, action_dim):
    # hidden = relu(x @ W1 + b1)
    h = jnp.dot(x_ref[...], w1_ref[...], preferred_element_type=jnp.float32)
    h = jnp.maximum(h + b1_ref[...], 0.0)
    # Fused heads: y[:, :A] = mean, y[:, A:2A] = log_std, rest = zero padding.
    y = jnp.dot(h, wh_ref[...], preferred_element_type=jnp.float32) + bh_ref[...]
    # Apply exp only to the log_std columns. Mask is a (1, head_pad) row that
    # broadcasts over the batch tile (cheaper than a full-tile iota); padded /
    # mean columns pass through (padding is sliced away in the wrapper).
    col = jax.lax.broadcasted_iota(jnp.int32, (1, y.shape[1]), 1)
    is_logstd = jnp.logical_and(col >= action_dim, col < 2 * action_dim)
    out_ref[...] = jnp.where(is_logstd, jnp.exp(y), y).astype(out_ref.dtype)


def prepare_params(params, action_dim):
    """One-time prep (off the hot path): fuse + lane-pad the two head layers."""
    hidden = params["w1"].shape[1]
    head_pad = _round_up(max(2 * action_dim, LANE), LANE)
    wh = jnp.zeros((hidden, head_pad), jnp.float32)
    wh = wh.at[:, :action_dim].set(params["wm"])
    wh = wh.at[:, action_dim:2 * action_dim].set(params["ws"])
    bh = jnp.zeros((1, head_pad), jnp.float32)
    bh = bh.at[:, :action_dim].set(params["bm"])
    bh = bh.at[:, action_dim:2 * action_dim].set(params["bs"])
    return {"w1": params["w1"], "b1": params["b1"], "wh": wh, "bh": bh}


@functools.partial(jax.jit, static_argnames=("action_dim", "batch_tile"))
def policy_network_forward(x, prepped, *, action_dim, batch_tile=1024):
    """x: (B, state_dim) f32. prepped: output of prepare_params(). -> (mean, std)."""
    B, state_dim = x.shape
    hidden = prepped["w1"].shape[1]
    head_pad = prepped["wh"].shape[1]

    # --- Batch tiling --------------------------------------------------------
    B_pad = _round_up(B, SUBLANE)
    tb = min(_round_up(batch_tile, SUBLANE), B_pad)
    n_tiles = pl.cdiv(B_pad, tb)
    if n_tiles == 1 and B_pad >= 2 * _MIN_SPLIT_ROWS:
        # Large batch collapsed to one tile: split so the "parallel" grid axis
        # can shard across both v7x TensorCores (harmless on 1-TC chips).
        n_tiles = 2
    tb = _round_up(pl.cdiv(B_pad, n_tiles), SUBLANE)
    B_pad = _round_up(B_pad, tb)
    n_tiles = B_pad // tb

    # Pad only the ragged tail; no copy at all when B is already aligned.
    if B_pad == B:
        x_p = x
    else:
        x_p = jnp.pad(x, ((0, B_pad - B), (0, 0)))

    flops = 2 * B_pad * (state_dim * hidden + hidden * head_pad)
    bytes_accessed = 4 * (B_pad * state_dim + state_dim * hidden + hidden
                          + hidden * head_pad + head_pad + B_pad * head_pad)
    cost = pl.CostEstimate(flops=flops,
                           transcendentals=B_pad * head_pad,
                           bytes_accessed=bytes_accessed)

    out = pl.pallas_call(
        functools.partial(policy_kernel, action_dim=action_dim),
        out_shape=jax.ShapeDtypeStruct((B_pad, head_pad), jnp.float32),
        grid=(n_tiles,),
        in_specs=[
            pl.BlockSpec((tb, state_dim), lambda i: (i, 0)),      # x batch tile
            pl.BlockSpec((state_dim, hidden), lambda i: (0, 0)),  # W1 (VMEM-resident)
            pl.BlockSpec((1, hidden), lambda i: (0, 0)),          # b1
            pl.BlockSpec((hidden, head_pad), lambda i: (0, 0)),   # fused head W
            pl.BlockSpec((1, head_pad), lambda i: (0, 0)),        # fused head b
        ],
        out_specs=pl.BlockSpec((tb, head_pad), lambda i: (i, 0)),
        compiler_params=pltpu.CompilerParams(
            dimension_semantics=("parallel",)),
        cost_estimate=cost,
    )(x_p, prepped["w1"], prepped["b1"], prepped["wh"], prepped["bh"])

    # Slices fuse under the surrounding jit (single pass over the padded slab).
    mean = out[:B, :action_dim]
    std = out[:B, action_dim:2 * action_dim]
    return mean, std


def init_params(key, state_dim, action_dim, minibatch):
    """Deterministic init matching nn.Linear shapes (stored transposed)."""
    ks = jax.random.split(key, 6)

    def linear(kw, kb, fan_in, fan_out):
        bound = 1.0 / jnp.sqrt(jnp.float32(fan_in))
        w = jax.random.uniform(kw, (fan_in, fan_out), jnp.float32, -bound, bound)
        b = jax.random.uniform(kb, (1, fan_out), jnp.float32, -bound, bound)
        return w, b

    w1, b1 = linear(ks[0], ks[1], state_dim, minibatch)
    wm, bm = linear(ks[2], ks[3], minibatch, action_dim)
    ws, bs = linear(ks[4], ks[5], minibatch, action_dim)
    return {"w1": w1, "b1": b1, "wm": wm, "bm": bm, "ws": ws, "bs": bs}


def reference_forward(x, params):
    h = jnp.maximum(x @ params["w1"] + params["b1"], 0.0)
    mean = h @ params["wm"] + params["bm"]
    std = jnp.exp(h @ params["ws"] + params["bs"])
    return mean, std


if __name__ == "__main__":
    state_dim, action_dim, minibatch = 16, 4, 32
    batch = 8

    key = jax.random.PRNGKey(0)
    k_x, k_p = jax.random.split(key)
    x = jax.random.normal(k_x, (batch, state_dim), jnp.float32)
    params = init_params(k_p, state_dim, action_dim, minibatch)
    prepped = prepare_params(params, action_dim)   # one-time prep, off the hot path

    mean, std = policy_network_forward(x, prepped, action_dim=action_dim)
    jax.block_until_ready((mean, std))

    ref_mean, ref_std = reference_forward(x, params)
    assert mean.shape == (batch, action_dim) and std.shape == (batch, action_dim)
    assert jnp.allclose(mean, ref_mean, atol=1e-5, rtol=1e-5)
    assert jnp.allclose(std, ref_std, atol=1e-5, rtol=1e-5)

    print("KERNEL_OK")
</pallas_src>

<mosaic_0001>
module attributes {stable_mosaic.version = 11 : i64} {
  func.func @policy_kernel(%arg0: i32, %arg1: memref<8x16xf32, #tpu.memory_space<vmem>>, %arg2: memref<16x32xf32, #tpu.memory_space<vmem>>, %arg3: memref<1x32xf32, #tpu.memory_space<vmem>>, %arg4: memref<32x128xf32, #tpu.memory_space<vmem>>, %arg5: memref<1x128xf32, #tpu.memory_space<vmem>>, %arg6: memref<8x128xf32, #tpu.memory_space<vmem>>) attributes {dimension_semantics = [#tpu.dimension_semantics<parallel>], iteration_bounds = array<i64: 1>, scalar_prefetch = 0 : i64, scratch_operands = 0 : i64, tpu.core_type = #tpu.core_type<tc>, window_params = [{transform_indices = @transform_0, window_bounds = array<i64: 8, 16>}, {pipeline_mode = #tpu.pipeline_mode<synchronous>, transform_indices = @transform_1, window_bounds = array<i64: 16, 32>}, {pipeline_mode = #tpu.pipeline_mode<synchronous>, transform_indices = @transform_2, window_bounds = array<i64: 1, 32>}, {pipeline_mode = #tpu.pipeline_mode<synchronous>, transform_indices = @transform_3, window_bounds = array<i64: 32, 128>}, {pipeline_mode = #tpu.pipeline_mode<synchronous>, transform_indices = @transform_4, window_bounds = array<i64: 1, 128>}, {transform_indices = @transform_5, window_bounds = array<i64: 8, 128>}]} {
    %c0 = arith.constant 0 : index
    %c0_0 = arith.constant 0 : index
    %0 = vector.load %arg1[%c0, %c0_0] : memref<8x16xf32, #tpu.memory_space<vmem>>, vector<8x16xf32>
    %c0_1 = arith.constant 0 : index
    %c0_2 = arith.constant 0 : index
    %1 = vector.load %arg2[%c0_1, %c0_2] : memref<16x32xf32, #tpu.memory_space<vmem>>, vector<16x32xf32>
    %cst = arith.constant dense<0.000000e+00> : vector<8x32xf32>
    %2 = tpu.matmul %0, %1, %cst {dimension_numbers = #tpu.dot_dimension_numbers<[1], [0], [0], [1], [0, 0, 1, 1], [], []>} : vector<8x16xf32>, vector<16x32xf32>, vector<8x32xf32> -> vector<8x32xf32>
    %c0_3 = arith.constant 0 : index
    %c0_4 = arith.constant 0 : index
    %3 = vector.load %arg3[%c0_3, %c0_4] : memref<1x32xf32, #tpu.memory_space<vmem>>, vector<1x32xf32>
    %4 = vector.broadcast %3 : vector<1x32xf32> to vector<8x32xf32>
    %5 = arith.addf %2, %4 : vector<8x32xf32>
    %cst_5 = arith.constant 0.000000e+00 : f32
    %6 = vector.broadcast %cst_5 : f32 to vector<8x32xf32>
    %7 = arith.maximumf %5, %6 : vector<8x32xf32>
    %c0_6 = arith.constant 0 : index
    %c0_7 = arith.constant 0 : index
    %8 = vector.load %arg4[%c0_6, %c0_7] : memref<32x128xf32, #tpu.memory_space<vmem>>, vector<32x128xf32>
    %cst_8 = arith.constant dense<0.000000e+00> : vector<8x128xf32>
    %9 = tpu.matmul %7, %8, %cst_8 {dimension_numbers = #tpu.dot_dimension_numbers<[1], [0], [0], [1], [0, 0, 1, 1], [], []>} : vector<8x32xf32>, vector<32x128xf32>, vector<8x128xf32> -> vector<8x128xf32>
    %c0_9 = arith.constant 0 : index
    %c0_10 = arith.constant 0 : index
    %10 = vector.load %arg5[%c0_9, %c0_10] : memref<1x128xf32, #tpu.memory_space<vmem>>, vector<1x128xf32>
    %11 = vector.broadcast %10 : vector<1x128xf32> to vector<8x128xf32>
    %12 = arith.addf %9, %11 : vector<8x128xf32>
    %13 = tpu.iota {dimensions = array<i32: 1>} : vector<1x128xi32>
    %c4_i32 = arith.constant 4 : i32
    %14 = vector.broadcast %c4_i32 : i32 to vector<1x128xi32>
    %15 = arith.cmpi sge, %13, %14 : vector<1x128xi32>
    %c8_i32 = arith.constant 8 : i32
    %16 = vector.broadcast %c8_i32 : i32 to vector<1x128xi32>
    %17 = arith.cmpi slt, %13, %16 : vector<1x128xi32>
    %18 = arith.andi %15, %17 : vector<1x128xi1>
    %19 = math.exp %12 : vector<8x128xf32>
    %20 = vector.shape_cast %18 : vector<1x128xi1> to vector<1x128xi1>
    %21 = vector.broadcast %20 : vector<1x128xi1> to vector<8x128xi1>
    %22 = arith.select %21, %19, %12 : vector<8x128xi1>, vector<8x128xf32>
    %c0_11 = arith.constant 0 : index
    %c0_12 = arith.constant 0 : index
    %23 = vector.load %arg6[%c0_11, %c0_12] : memref<8x128xf32, #tpu.memory_space<vmem>>, vector<8x128xf32>
    tpu.vector_store %arg6[%c0_11, %c0_12], %22 {strides = array<i32>} : memref<8x128xf32, #tpu.memory_space<vmem>>, vector<8x128xf32>,
    return
  }
  func.func @transform_0(%arg0: i32) -> (i32, i32) {
    %c0_i32 = arith.constant 0 : i32
    %c0_i32_0 = arith.constant 0 : i32
    return %arg0, %c0_i32 : i32, i32
  }
  func.func @transform_1(%arg0: i32) -> (i32, i32) {
    %c0_i32 = arith.constant 0 : i32
    %c0_i32_0 = arith.constant 0 : i32
    %c0_i32_1 = arith.constant 0 : i32
    return %c0_i32, %c0_i32_0 : i32, i32
  }
  func.func @transform_2(%arg0: i32) -> (i32, i32) {
    %c0_i32 = arith.constant 0 : i32
    %c0_i32_0 = arith.constant 0 : i32
    %c0_i32_1 = arith.constant 0 : i32
    return %c0_i32, %c0_i32_0 : i32, i32
  }
  func.func @transform_3(%arg0: i32) -> (i32, i32) {
    %c0_i32 = arith.constant 0 : i32
    %c0_i32_0 = arith.constant 0 : i32
    %c0_i32_1 = arith.constant 0 : i32
    return %c0_i32, %c0_i32_0 : i32, i32
  }
  func.func @transform_4(%arg0: i32) -> (i32, i32) {
    %c0_i32 = arith.constant 0 : i32
    %c0_i32_0 = arith.constant 0 : i32
    %c0_i32_1 = arith.constant 0 : i32
    return %c0_i32, %c0_i32_0 : i32, i32
  }
  func.func @transform_5(%arg0: i32) -> (i32, i32) {
    %c0_i32 = arith.constant 0 : i32
    %c0_i32_0 = arith.constant 0 : i32
    return %arg0, %c0_i32 : i32, i32
  }
}

</mosaic_0001>

<bundles_post_ra>
// kernel: policy_network_forward.1
= control target key start
LH: loop header
LB: loop body
LE: loop exit
PB: predicated region body
PF: predicated region fallthrough
CT: control target
= control target key end

     0   :  { %10 = vsyncpa [#allocation3], 0  ;;  %s454_s0 = inlined_call_operand.hbm [shape: f32[8,16], index: 0, kind: input, shape index: {}]   ;;  %s455_s1 = inlined_call_operand.hbm [shape: f32[16,32], index: 1, kind: input, shape index: {}]   ;;  %s456_s2 = inlined_call_operand.vmem [shape: f32[1,32], index: 2, kind: input, shape index: {}]   ;;  %s457_s3 = inlined_call_operand.hbm [shape: f32[32,128], index: 3, kind: input, shape index: {}]   ;;  %s458_s4 = inlined_call_operand.vmem [shape: f32[1,128], index: 4, kind: input, shape index: {}]   ;;  %s459_s5 = inlined_call_operand.vmem [shape: f32[8,128], index: 5, kind: output, shape index: {}]  }
   0x1   :  { %11 = vsyncpa [#allocation5], 0  ;;  %s365_s18 = smov [#allocation4]   ;;  %s295_s22 = scalar_lea.hbm %s455_s1, 256 }
   0x2   :  { %s27_s19 = sshll.u32 %s365_s18, 4  ;;  %p296_p0 = scmp.ne.s32.totalorder %s455_s1, %s295_s22  ;;  %s28_s19 = int_to_ptr.vmem [resolvable:$true] %s27_s19 }
   0x3   :  { %p299_p1 = scmp.lt.u32.totalorder %s295_s22, %s455_s1 }
   0x5   :  { %p301_p2 = pnand %p299_p1, %p296_p0 }
   0x7   :  { %304 = shalt.err (!%p301_p2)
}
   0x8   :  { %s305_s27 = scalar_lea.vmem %s28_s19, 256  ;;  %p310_p4 = scmp.lt.s32.totalorder %s28_s19, %s28_s19 }
   0x9   :  { %p306_p3 = scmp.ne.s32.totalorder %s28_s19, %s305_s27  ;;  %p311_p5 = scmp.lt.s32.totalorder %s305_s27, %s305_s27 }
   0xb   :  { %p312_p6 = por %p311_p5, %p310_p4 }
   0xd   :  { %p313_p7 = pnand %p312_p6, %p306_p3 }
   0xf   :  { %316 = shalt.err (!%p313_p7)
}
  0x10   :  { %s366_s28 = smov 128   ;;  %s367_s29 = smov 8  }
  0x11   :  { %33 = dma.hbm_to_vmem [thread:$0]  %s455_s1, 256, %s28_s19, [#allocation5], %s366_s28, %s366_s28, %s367_s29  }
  0x12   :  { %s368_s7 = smov [#allocation2]   ;;  %s369_s9 = smov [#allocation6]  }
  0x13   :  { %s18_s8 = sshll.u32 %s368_s7, 4  ;;  %s41_s10 = sshll.u32 %s369_s9, 4  ;;  %s19_s8 = int_to_ptr.vmem [resolvable:$true] %s18_s8  ;;  %s42_s10 = int_to_ptr.vmem [resolvable:$true] %s41_s10 }
  0x14   :  { %s317_s13 = scalar_lea.hbm %s454_s0, 128 }
  0x15   :  { %p318_p8 = scmp.ne.s32.totalorder %s454_s0, %s317_s13  ;;  %p321_p9 = scmp.lt.u32.totalorder %s317_s13, %s454_s0 }
  0x17   :  { %p323_p10 = pnand %p321_p9, %p318_p8 }
  0x19   :  { %326 = shalt.err (!%p323_p10)
}
  0x1a   :  { %s327_s1 = scalar_lea.vmem %s19_s8, 128  ;;  %p332_p12 = scmp.lt.s32.totalorder %s19_s8, %s19_s8 }
  0x1b   :  { %p328_p11 = scmp.ne.s32.totalorder %s19_s8, %s327_s1  ;;  %p333_p13 = scmp.lt.s32.totalorder %s327_s1, %s327_s1 }
  0x1d   :  { %p334_p0 = por %p333_p13, %p332_p12 }
  0x1f   :  { %p335_p1 = pnand %p334_p0, %p328_p11 }
  0x21   :  { %338 = shalt.err (!%p335_p1)
}
  0x22   :  { %21 = dma.hbm_to_vmem [thread:$0]  %s454_s0, 128, %s19_s8, [#allocation3]  }
  0x23   :  { %s339_s22 = scalar_lea.hbm %s457_s3, 512 }
  0x24   :  { %p340_p2 = scmp.ne.s32.totalorder %s457_s3, %s339_s22  ;;  %p343_p3 = scmp.lt.u32.totalorder %s339_s22, %s457_s3 }
  0x26   :  { %p345_p4 = pnand %p343_p3, %p340_p2 }
  0x28   :  { %348 = shalt.err (!%p345_p4)
}
  0x29   :  { %s349_s27 = scalar_lea.vmem %s42_s10, 512  ;;  %p354_p6 = scmp.lt.s32.totalorder %s42_s10, %s42_s10 }
  0x2a   :  { %p350_p5 = scmp.ne.s32.totalorder %s42_s10, %s349_s27  ;;  %p355_p7 = scmp.lt.s32.totalorder %s349_s27, %s349_s27 }
  0x2c   :  { %p356_p8 = por %p355_p7, %p354_p6 }
  0x2e   :  { %p357_p9 = pnand %p356_p8, %p350_p5 }
  0x30   :  { %360 = shalt.err (!%p357_p9)
}
  0x31   :  { %47 = dma.hbm_to_vmem [thread:$0]  %s457_s3, 512, %s42_s10, [#allocation5], %s366_s28, %s366_s28, %s367_s29  }
  0x32   :  { %361 = dma.done.wait [#allocation3], 128  }
  0x33   :  { %362 = vsyncadd [#allocation3], 4294967168 }
  0x34   :  { %363 = dma.done.wait [#allocation5], 768  }
  0x35   :  { %364 = vsyncadd [#allocation5], 4294966528  ;;  %v370_v0 = vmov 0.0|0.0   ;;  %vm371_vm0 = vmmov 0   ;;  %v372_v1 = vmov 0.0   ;;  %v60_v2 = vld [vmem:[#allocation4] sm:$0xff]  ;;  %v229_v21 = vlaneseq }
  0x36   :  { %276 = vmatprep.subr.bf16.mxu0 %v370_v0  ;;  %262 = vmatprep.mubr.msk.f32.mxu0 %vm371_vm0, %v372_v1  ;;  %v61_v3 = vld [vmem:[#allocation4 + $0x8] sm:$0xff]  ;;  %v144_v5 = vld [vmem:[#allocation6] sm:$0xff]  ;;  %v145_v6 = vld [vmem:[#allocation6 + $0x8] sm:$0xff]  ;;  %vm69_vm1 = vcmask 130048   ;;  %vm155_vm2 = vcmask 261120  }
  0x37   :  { %279 = vmatprep.subr.bf16.mxu1 %v370_v0  ;;  %273 = vmatprep.mubr.msk.f32.mxu1 %vm371_vm0, %v372_v1  ;;  %v277_v4 = vpack.c.bf16 %v61_v3, %v60_v2  ;;  %v280_v7 = vpack.c.bf16 %v145_v6, %v144_v5  ;;  %v59_v8 = vld [vmem:[#allocation2] sm:$0xff]  ;;  %v146_v9 = vld [vmem:[#allocation6 + $0x10] sm:$0xff]  ;;  %v147_v10 = vld [vmem:[#allocation6 + $0x18] sm:$0xff]  ;;  %v230_v23 = vand.u32 127, %v229_v21 }
  0x38   :  { %v283_v11 = vpack.c.bf16 %v147_v10, %v146_v9  ;;  %v246_v12 = vld [vmem:[%s456_s2] ss:$0 sm:$0xff] }
  0x39   :  { %278 = vmatpush3.bf16.msra.mxu0 %v277_v4  ;;  %281 = vmatpush3.bf16.msra.mxu1 %v280_v7  ;;  %v248_v17 = vld [vmem:[%s458_s4] ss:$0 sm:$0xff]  ;;  %vm231_vm3 = vcmp.ge.s32.totalorder %v230_v23, 4  ;;  %vm232_vm4 = vcmp.lt.s32.totalorder %v230_v23, 8 }
  0x3a   :  { %282 = vmatprep.subr.bf16.mxu1 %v370_v0  ;;  %vm233_vm5 = vmand %vm231_vm3, %vm232_vm4 }
  0x3c   :  { %263 = vmatmul.mubr.msk.f32.vlgmr.msra.gmra.mrb[0].mxu0 %vm69_vm1, %v59_v8 }
  0x3d   :  { %284 = vmatpush3.bf16.msra.mxu1 %v283_v11 }
 0x10f   :  { %v139_v13 = vpop.f32.mrb[0].mxu0 }
 0x110   :  { %v140_v14 = vadd.f32 %v246_v12, %v139_v13  ;;  %v264_v15 = vpop.f32.mrb[1].mxu0 }
 0x112   :  { %v143_v16 = vmax.f32 %v140_v14, 0.0 }
 0x114   :  { %274 = vmatmul.mubr.msk.f32.vlgmr.msra.gmra.mrb[0].mxu1 %vm155_vm2, %v143_v16 }
 0x1e7   :  { %v225_v18 = vpop.f32.mrb[0].mxu1 }
 0x1e8   :  { %v226_v19 = vadd.f32 %v248_v17, %v225_v18  ;;  %v275_v20 = vpop.f32.mrb[1].mxu1 }
 0x1ea   :  { %v234_v22 = vmul.f32 1.442695, %v226_v19 }
 0x1ec   :  { %293 = vpow2.f32 %v234_v22 }
 0x1f6   :  { %v294_v24 = vpop.eup %293 }
 0x1f7   :  { %v238_v25 = vsel %vm233_vm5, %v294_v24, %v226_v19 }
 0x1f8   :  { %239 = vst [vmem:[%s459_s5] sm:$0xff] %v238_v25 }
 0x1f9   :  { %244 = vsyncpa [#allocation3], 1 }
 0x1fa   :  { %245 = vsyncpa [#allocation5], 1 }

</bundles_post_ra>
